<compile_context>
chip_gen: v7x
topology: tpu7x:2x2x1
jax: 0.10.0
libtpu: 0.0.40
codegen_flags: <defaults>
</compile_context>

<pallas_src>
import numpy as np
import jax
import jax.numpy as jnp
from jax.experimental import pallas as pl
from jax.experimental.pallas import tpu as pltpu


def _round_up(a, m):
    return (a + m - 1) // m * m


def mlp_disc_kernel(x_ref, w1_ref, b1_ref, w2_ref, b2_ref, w3_ref, b3_ref, o_ref):
    # secured_layers: single Linear (no activation after it, per the module).
    # x/w1 may be bf16; accumulate in f32 on the MXU.
    h = jnp.dot(x_ref[...], w1_ref[...], preferred_element_type=jnp.float32)
    h = h + b1_ref[...]

    # public_layers: Linear -> LeakyReLU(0.2) -> Linear
    w2 = w2_ref[...].astype(jnp.float32)          # tiny upcast; keep activations in f32
    h = jnp.dot(h, w2, preferred_element_type=jnp.float32) + b2_ref[...]
    h = jnp.where(h >= 0.0, h, 0.2 * h)           # LeakyReLU(0.2) on the VPU, f32

    # Final Linear has out_features == 1: VPU multiply + XLU lane reduction
    # instead of a wasteful (TM,64)@(64,1) MXU pass.
    w3_row = w3_ref[...].astype(jnp.float32)      # (1, D2)
    logits = jnp.sum(h * w3_row, axis=-1, keepdims=True) + b3_ref[...]

    # Sigmoid in f32 (EUP exp). Safe in f32: exp overflow -> inf -> result 0.0.
    o_ref[...] = (1.0 / (1.0 + jnp.exp(-logits))).astype(o_ref.dtype)


def mlp_disc_forward(x, params, *, compute_dtype=jnp.bfloat16, tm=512):
    """MLP_Disc forward.

    x: [B, C, H, W].  params: ((w1,b1),(w2,b2),(w3,b3)) with weights stored as
    [in_features, out_features].
    compute_dtype: dtype of x and the two large weight matrices inside the
    kernel.  bf16 (default) halves the dominant HBM traffic and feeds the
    bf16 MXU natively; f32 reproduces the reference numerics exactly.
    Accumulation and elementwise math are always f32.
    tm: batch tile size. Keep <= 2048 so double-buffered x tiles fit v7x's
    64 MiB VMEM; 512 is ample for this small network.
    """
    (w1, b1), (w2, b2), (w3, b3) = params
    B = x.shape[0]
    feat = int(np.prod(x.shape[1:]))
    D0, D1 = w1.shape
    D2, D3 = w3.shape
    assert feat == D0 and w2.shape == (D1, D2) and D3 == 1

    # Flatten exactly like the torch forward, cast per compute_dtype.
    x2 = x.reshape(B, feat).astype(compute_dtype)
    w1c = w1.astype(compute_dtype)
    w2c = w2.astype(compute_dtype)
    b1r = b1.reshape(1, D1).astype(jnp.float32)
    b2r = b2.reshape(1, D2).astype(jnp.float32)
    w3r = w3.reshape(1, D2).astype(jnp.float32)   # row form for the VPU reduce
    b3r = b3.reshape(1, 1).astype(jnp.float32)

    # Batch tiling: pad B to a multiple of the tile size (multiple of 8 sublanes).
    tm = max(8, min(int(tm), _round_up(B, 8)))
    tm = _round_up(tm, 8)
    b_pad = _round_up(B, tm)
    if b_pad != B:
        x2 = jnp.pad(x2, ((0, b_pad - B), (0, 0)))
    grid = (b_pad // tm,)

    itemsize = jnp.dtype(compute_dtype).itemsize
    cost = pl.CostEstimate(
        flops=2 * b_pad * (D0 * D1 + D1 * D2 + D2 * D3),
        transcendentals=b_pad * D3,
        bytes_accessed=(x2.size * itemsize
                        + (w1c.size + w2c.size) * itemsize
                        + (b1r.size + b2r.size + w3r.size + b3r.size) * 4
                        + b_pad * D3 * 4),
    )

    def const(shape):
        # Constant block index: DMA'd once, stays resident across batch tiles.
        return pl.BlockSpec(shape, lambda i: tuple(0 for _ in shape))

    out = pl.pallas_call(
        mlp_disc_kernel,
        out_shape=jax.ShapeDtypeStruct((b_pad, D3), jnp.float32),
        grid=grid,
        in_specs=[
            pl.BlockSpec((tm, D0), lambda i: (i, 0)),     # x tile, pipelined over batch
            const((D0, D1)), const((1, D1)),              # w1, b1 (VMEM-resident)
            const((D1, D2)), const((1, D2)),              # w2, b2 (VMEM-resident)
            const((1, D2)), const((1, 1)),                # w3 row, b3 (VMEM-resident)
        ],
        # Note: output last dim is 1 (masked stores), but output bytes are
        # ~1/1024 of the input bytes so this is negligible here; for very large
        # batches a transposed (1, B) lane-dense output would be preferable.
        out_specs=pl.BlockSpec((tm, D3), lambda i: (i, 0)),
        compiler_params=pltpu.CompilerParams(
            dimension_semantics=("parallel",),            # v7x: tiles split across both TCs
        ),
        cost_estimate=cost,
    )(x2, w1c, b1r, w2c, b2r, w3r, b3r)
    return out[:B]


def init_params(key, layers_shapes):
    """Deterministic parameter init for Linear layers; weights stored [in, out]."""
    params = []
    for i in range(len(layers_shapes) - 1):
        key, kw, kb = jax.random.split(key, 3)
        fan_in, fan_out = layers_shapes[i], layers_shapes[i + 1]
        bound = 1.0 / np.sqrt(fan_in)
        w = jax.random.uniform(kw, (fan_in, fan_out), jnp.float32, -bound, bound)
        b = jax.random.uniform(kb, (fan_out,), jnp.float32, -bound, bound)
        params.append((w, b))
    return tuple(params)


def mlp_disc_reference(x, params):
    """Pure-JAX f32 reference matching the torch forward semantics."""
    (w1, b1), (w2, b2), (w3, b3) = params
    h = x.reshape(x.shape[0], -1)
    h = h @ w1 + b1                       # secured: Linear
    h = h @ w2 + b2                       # public: Linear
    h = jnp.where(h >= 0.0, h, 0.2 * h)   # LeakyReLU(0.2)
    h = h @ w3 + b3                       # public: Linear
    return jax.nn.sigmoid(h)


if __name__ == "__main__":
    key = jax.random.PRNGKey(0)
    kx, kp = jax.random.split(key)

    B, C, H, W = 2, 4, 16, 16
    x = jax.random.normal(kx, (B, C, H, W), jnp.float32)

    # num_sec_layers = 1, layers_shapes = (C*H*W, 128, 64, 1)
    layers_shapes = (C * H * W, 128, 64, 1)
    params = init_params(kp, layers_shapes)

    ref = mlp_disc_reference(x, params)

    # Exact-precision path (f32 throughout): must match the reference tightly.
    out_f32 = jax.block_until_ready(
        mlp_disc_forward(x, params, compute_dtype=jnp.float32))
    np.testing.assert_allclose(np.asarray(out_f32), np.asarray(ref),
                               rtol=1e-5, atol=1e-5)

    # Fast path (bf16 weights/x per perf feedback, f32 accumulation/elementwise):
    # loose check against the f32 reference.
    out_bf16 = jax.block_until_ready(
        mlp_disc_forward(x, params, compute_dtype=jnp.bfloat16))
    np.testing.assert_allclose(np.asarray(out_bf16), np.asarray(ref),
                               rtol=0.0, atol=2e-2)

    print("KERNEL_OK")
</pallas_src>

<mosaic_0001>
module attributes {stable_mosaic.version = 11 : i64} {
  func.func @mlp_disc_kernel(%arg0: i32, %arg1: memref<8x1024xf32, #tpu.memory_space<vmem>>, %arg2: memref<1024x128xf32, #tpu.memory_space<vmem>>, %arg3: memref<1x128xf32, #tpu.memory_space<vmem>>, %arg4: memref<128x64xf32, #tpu.memory_space<vmem>>, %arg5: memref<1x64xf32, #tpu.memory_space<vmem>>, %arg6: memref<1x64xf32, #tpu.memory_space<vmem>>, %arg7: memref<1x1xf32, #tpu.memory_space<vmem>>, %arg8: memref<8x1xf32, #tpu.memory_space<vmem>>) attributes {dimension_semantics = [#tpu.dimension_semantics<parallel>], iteration_bounds = array<i64: 1>, scalar_prefetch = 0 : i64, scratch_operands = 0 : i64, tpu.core_type = #tpu.core_type<tc>, window_params = [{transform_indices = @transform_0, window_bounds = array<i64: 8, 1024>}, {pipeline_mode = #tpu.pipeline_mode<synchronous>, transform_indices = @transform_1, window_bounds = array<i64: 1024, 128>}, {pipeline_mode = #tpu.pipeline_mode<synchronous>, transform_indices = @transform_2, window_bounds = array<i64: 1, 128>}, {pipeline_mode = #tpu.pipeline_mode<synchronous>, transform_indices = @transform_3, window_bounds = array<i64: 128, 64>}, {pipeline_mode = #tpu.pipeline_mode<synchronous>, transform_indices = @transform_4, window_bounds = array<i64: 1, 64>}, {pipeline_mode = #tpu.pipeline_mode<synchronous>, transform_indices = @transform_5, window_bounds = array<i64: 1, 64>}, {pipeline_mode = #tpu.pipeline_mode<synchronous>, transform_indices = @transform_6, window_bounds = array<i64: 1, 1>}, {transform_indices = @transform_7, window_bounds = array<i64: 8, 1>}]} {
    %c0 = arith.constant 0 : index
    %c0_0 = arith.constant 0 : index
    %0 = vector.load %arg1[%c0, %c0_0] : memref<8x1024xf32, #tpu.memory_space<vmem>>, vector<8x1024xf32>
    %c0_1 = arith.constant 0 : index
    %c0_2 = arith.constant 0 : index
    %1 = vector.load %arg2[%c0_1, %c0_2] : memref<1024x128xf32, #tpu.memory_space<vmem>>, vector<1024x128xf32>
    %cst = arith.constant dense<0.000000e+00> : vector<8x128xf32>
    %2 = tpu.matmul %0, %1, %cst {dimension_numbers = #tpu.dot_dimension_numbers<[1], [0], [0], [1], [0, 0, 1, 1], [], []>} : vector<8x1024xf32>, vector<1024x128xf32>, vector<8x128xf32> -> vector<8x128xf32>
    %c0_3 = arith.constant 0 : index
    %c0_4 = arith.constant 0 : index
    %3 = vector.load %arg3[%c0_3, %c0_4] : memref<1x128xf32, #tpu.memory_space<vmem>>, vector<1x128xf32>
    %4 = vector.broadcast %3 : vector<1x128xf32> to vector<8x128xf32>
    %5 = arith.addf %2, %4 : vector<8x128xf32>
    %c0_5 = arith.constant 0 : index
    %c0_6 = arith.constant 0 : index
    %6 = vector.load %arg4[%c0_5, %c0_6] : memref<128x64xf32, #tpu.memory_space<vmem>>, vector<128x64xf32>
    %cst_7 = arith.constant dense<0.000000e+00> : vector<8x64xf32>
    %7 = tpu.matmul %5, %6, %cst_7 {dimension_numbers = #tpu.dot_dimension_numbers<[1], [0], [0], [1], [0, 0, 1, 1], [], []>} : vector<8x128xf32>, vector<128x64xf32>, vector<8x64xf32> -> vector<8x64xf32>
    %c0_8 = arith.constant 0 : index
    %c0_9 = arith.constant 0 : index
    %8 = vector.load %arg5[%c0_8, %c0_9] : memref<1x64xf32, #tpu.memory_space<vmem>>, vector<1x64xf32>
    %9 = vector.broadcast %8 : vector<1x64xf32> to vector<8x64xf32>
    %10 = arith.addf %7, %9 : vector<8x64xf32>
    %cst_10 = arith.constant 0.000000e+00 : f32
    %11 = vector.broadcast %cst_10 : f32 to vector<8x64xf32>
    %12 = arith.cmpf oge, %10, %11 : vector<8x64xf32>
    %cst_11 = arith.constant 2.000000e-01 : f32
    %13 = vector.broadcast %cst_11 : f32 to vector<8x64xf32>
    %14 = arith.mulf %13, %10 : vector<8x64xf32>
    %15 = arith.select %12, %10, %14 : vector<8x64xi1>, vector<8x64xf32>
    %c0_12 = arith.constant 0 : index
    %c0_13 = arith.constant 0 : index
    %16 = vector.load %arg6[%c0_12, %c0_13] : memref<1x64xf32, #tpu.memory_space<vmem>>, vector<1x64xf32>
    %17 = vector.broadcast %16 : vector<1x64xf32> to vector<8x64xf32>
    %18 = arith.mulf %15, %17 : vector<8x64xf32>
    %cst_14 = arith.constant dense<0.000000e+00> : vector<8xf32>
    %19 = vector.multi_reduction <add>, %18, %cst_14 [1] : vector<8x64xf32> to vector<8xf32>
    %20 = vector.shape_cast %19 : vector<8xf32> to vector<8x1xf32>
    %c0_15 = arith.constant 0 : index
    %c0_16 = arith.constant 0 : index
    %21 = vector.load %arg7[%c0_15, %c0_16] : memref<1x1xf32, #tpu.memory_space<vmem>>, vector<1x1xf32>
    %22 = vector.broadcast %21 : vector<1x1xf32> to vector<8x1xf32>
    %23 = arith.addf %20, %22 : vector<8x1xf32>
    %cst_17 = arith.constant 0.000000e+00 : f32
    %24 = vector.broadcast %cst_17 : f32 to vector<8x1xf32>
    %25 = arith.subf %24, %23 : vector<8x1xf32>
    %26 = math.exp %25 : vector<8x1xf32>
    %cst_18 = arith.constant 1.000000e+00 : f32
    %27 = vector.broadcast %cst_18 : f32 to vector<8x1xf32>
    %28 = arith.addf %27, %26 : vector<8x1xf32>
    %cst_19 = arith.constant 1.000000e+00 : f32
    %29 = vector.broadcast %cst_19 : f32 to vector<8x1xf32>
    %30 = arith.divf %29, %28 : vector<8x1xf32>
    %c0_20 = arith.constant 0 : index
    %c0_21 = arith.constant 0 : index
    %31 = vector.load %arg8[%c0_20, %c0_21] : memref<8x1xf32, #tpu.memory_space<vmem>>, vector<8x1xf32>
    tpu.vector_store %arg8[%c0_20, %c0_21], %30 {strides = array<i32>} : memref<8x1xf32, #tpu.memory_space<vmem>>, vector<8x1xf32>,
    return
  }
  func.func @transform_0(%arg0: i32) -> (i32, i32) {
    %c0_i32 = arith.constant 0 : i32
    %c0_i32_0 = arith.constant 0 : i32
    return %arg0, %c0_i32 : i32, i32
  }
  func.func @transform_1(%arg0: i32) -> (i32, i32) {
    %c0_i32 = arith.constant 0 : i32
    %c0_i32_0 = arith.constant 0 : i32
    %c0_i32_1 = arith.constant 0 : i32
    return %c0_i32, %c0_i32_0 : i32, i32
  }
  func.func @transform_2(%arg0: i32) -> (i32, i32) {
    %c0_i32 = arith.constant 0 : i32
    %c0_i32_0 = arith.constant 0 : i32
    %c0_i32_1 = arith.constant 0 : i32
    return %c0_i32, %c0_i32_0 : i32, i32
  }
  func.func @transform_3(%arg0: i32) -> (i32, i32) {
    %c0_i32 = arith.constant 0 : i32
    %c0_i32_0 = arith.constant 0 : i32
    %c0_i32_1 = arith.constant 0 : i32
    return %c0_i32, %c0_i32_0 : i32, i32
  }
  func.func @transform_4(%arg0: i32) -> (i32, i32) {
    %c0_i32 = arith.constant 0 : i32
    %c0_i32_0 = arith.constant 0 : i32
    %c0_i32_1 = arith.constant 0 : i32
    return %c0_i32, %c0_i32_0 : i32, i32
  }
  func.func @transform_5(%arg0: i32) -> (i32, i32) {
    %c0_i32 = arith.constant 0 : i32
    %c0_i32_0 = arith.constant 0 : i32
    %c0_i32_1 = arith.constant 0 : i32
    return %c0_i32, %c0_i32_0 : i32, i32
  }
  func.func @transform_6(%arg0: i32) -> (i32, i32) {
    %c0_i32 = arith.constant 0 : i32
    %c0_i32_0 = arith.constant 0 : i32
    %c0_i32_1 = arith.constant 0 : i32
    return %c0_i32, %c0_i32_0 : i32, i32
  }
  func.func @transform_7(%arg0: i32) -> (i32, i32) {
    %c0_i32 = arith.constant 0 : i32
    %c0_i32_0 = arith.constant 0 : i32
    return %arg0, %c0_i32 : i32, i32
  }
}

</mosaic_0001>

<bundles_post_ra>
// kernel: tpu_custom_call.1
= control target key start
LH: loop header
LB: loop body
LE: loop exit
PB: predicated region body
PF: predicated region fallthrough
CT: control target
= control target key end

     0   :  { %s1121_s0 = inlined_call_operand.vmem [shape: f32[8,1024], index: 0, kind: input, shape index: {}]   ;;  %s1122_s1 = inlined_call_operand.hbm [shape: f32[1024,128], index: 1, kind: input, shape index: {}]   ;;  %s1123_s2 = inlined_call_operand.vmem [shape: f32[1,128], index: 2, kind: input, shape index: {}]   ;;  %s1124_s3 = inlined_call_operand.vmem [shape: f32[128,64], index: 3, kind: input, shape index: {}]   ;;  %s1125_s4 = inlined_call_operand.vmem [shape: f32[1,64], index: 4, kind: input, shape index: {}]   ;;  %s1126_s5 = inlined_call_operand.vmem [shape: f32[1,64], index: 5, kind: input, shape index: {}]   ;;  %s1127_s6 = inlined_call_operand.<no memory space> [shape: f32[1,1], index: 6, kind: input, shape index: {}]   ;;  %s1128_s7 = inlined_call_operand.vmem [shape: f32[8,1], index: 7, kind: output, shape index: {}]  }
   0x1   :  { %v12_v0 = vstv %s1127_s6 }
   0x2   :  { %13 = vst [vmem:[#allocation2] sm:$0x1] %v12_v0 }
   0x3   :  { %14 = vsyncpa [#allocation4], 0  ;;  %s976_s26 = smov [#allocation3]   ;;  %s952_s30 = scalar_lea.hbm %s1122_s1, 16384 }
   0x4   :  { %s22_s27 = sshll.u32 %s976_s26, 4  ;;  %p953_p0 = scmp.ne.s32.totalorder %s1122_s1, %s952_s30  ;;  %s23_s27 = int_to_ptr.vmem [resolvable:$true] %s22_s27 }
   0x5   :  { %p956_p1 = scmp.lt.u32.totalorder %s952_s30, %s1122_s1 }
   0x7   :  { %p958_p2 = pnand %p956_p1, %p953_p0 }
   0x9   :  { %961 = shalt.err (!%p958_p2)
}
   0xa   :  { %s962_s6 = scalar_lea.vmem %s23_s27, 16384  ;;  %p967_p4 = scmp.lt.s32.totalorder %s23_s27, %s23_s27 }
   0xb   :  { %p963_p3 = scmp.ne.s32.totalorder %s23_s27, %s962_s6  ;;  %p968_p5 = scmp.lt.s32.totalorder %s962_s6, %s962_s6 }
   0xd   :  { %p969_p6 = por %p968_p5, %p967_p4 }
   0xf   :  { %p970_p7 = pnand %p969_p6, %p963_p3 }
  0x11   :  { %973 = shalt.err (!%p970_p7)
}
  0x12   :  { %s977_s12 = smov 128   ;;  %s978_s13 = smov 8  }
  0x13   :  { %28 = dma.hbm_to_vmem [thread:$0]  %s1122_s1, 16384, %s23_s27, [#allocation4], %s977_s12, %s977_s12, %s978_s13  }
  0x14   :  { %974 = dma.done.wait [#allocation4], 16384  }
  0x15   :  { %975 = vsyncadd [#allocation4], 4294950912  ;;  %v66_v1 = vld [vmem:[#allocation3 + $0x80] sm:$0xff]  ;;  %v67_v2 = vld [vmem:[#allocation3 + $0x88] sm:$0xff]  ;;  %vm980_vm0 = vmmov 0   ;;  %vm569_vm2 = vcmask 523264  }
  0x16   :  { %v50_v3 = vld [vmem:[#allocation3] sm:$0xff]  ;;  %v790_v4 = vpack.c.bf16 %v67_v2, %v66_v1  ;;  %v51_v5 = vld [vmem:[#allocation3 + $0x8] sm:$0xff]  ;;  %v68_v12 = vld [vmem:[#allocation3 + $0x90] sm:$0xff]  ;;  %vm587_vm3 = vcmask 7168  }
  0x17   :  { %v98_v6 = vld [vmem:[#allocation3 + $0x180] sm:$0xff]  ;;  %v99_v7 = vld [vmem:[#allocation3 + $0x188] sm:$0xff]  ;;  %v792_v8 = vpack.c.bf16 %v51_v5, %v50_v3  ;;  %v69_v14 = vld [vmem:[#allocation3 + $0x98] sm:$0xff] }
  0x18   :  { %v822_v9 = vpack.c.bf16 %v99_v7, %v98_v6  ;;  %v82_v10 = vld [vmem:[#allocation3 + $0x100] sm:$0xff]  ;;  %v83_v11 = vld [vmem:[#allocation3 + $0x108] sm:$0xff]  ;;  %791 = vmatprep.subr.bf16.mxu0 %v790_v4  ;;  %v52_v15 = vld [vmem:[#allocation3 + $0x10] sm:$0xff]  ;;  %v794_v17 = vpack.c.bf16 %v69_v14, %v68_v12 }
  0x19   :  { %v824_v13 = vpack.c.bf16 %v83_v11, %v82_v10  ;;  %v53_v16 = vld [vmem:[#allocation3 + $0x18] sm:$0xff]  ;;  %793 = vmatpush3.bf16.msra.mxu0 %v792_v8  ;;  %v100_v19 = vld [vmem:[#allocation3 + $0x190] sm:$0xff]  ;;  %v70_v24 = vld [vmem:[#allocation3 + $0xa0] sm:$0xff] }
  0x1a   :  { %823 = vmatprep.subr.bf16.mxu1 %v822_v9  ;;  %v796_v18 = vpack.c.bf16 %v53_v16, %v52_v15  ;;  %v101_v20 = vld [vmem:[#allocation3 + $0x198] sm:$0xff]  ;;  %v84_v21 = vld [vmem:[#allocation3 + $0x110] sm:$0xff]  ;;  %v71_v25 = vld [vmem:[#allocation3 + $0xa8] sm:$0xff]  ;;  %795 = vmatprep.subr.bf16.mxu0 %v794_v17 }
  0x1b   :  { %825 = vmatpush3.bf16.msra.mxu1 %v824_v13  ;;  %v826_v22 = vpack.c.bf16 %v101_v20, %v100_v19  ;;  %v85_v23 = vld [vmem:[#allocation3 + $0x118] sm:$0xff]  ;;  %v798_v27 = vpack.c.bf16 %v71_v25, %v70_v24  ;;  %v54_v28 = vld [vmem:[#allocation3 + $0x20] sm:$0xff]  ;;  %v55_v29 = vld [vmem:[#allocation3 + $0x28] sm:$0xff] }
  0x1c   :  { %v828_v26 = vpack.c.bf16 %v85_v23, %v84_v21  ;;  %v102_v30 = vld [vmem:[#allocation3 + $0x1a0] sm:$0xff]  ;;  %v103_v31 = vld [vmem:[#allocation3 + $0x1a8] sm:$0xff]  ;;  %v800_v34 = vpack.c.bf16 %v55_v29, %v54_v28  ;;  %v72_v36 = vld [vmem:[#allocation3 + $0xb0] sm:$0xff] }
  0x1d   :  { %827 = vmatprep.subr.bf16.mxu1 %v826_v22  ;;  %v86_v32 = vld [vmem:[#allocation3 + $0x120] sm:$0xff]  ;;  %v87_v33 = vld [vmem:[#allocation3 + $0x128] sm:$0xff]  ;;  %797 = vmatpush3.bf16.msra.mxu0 %v796_v18  ;;  %v830_v35 = vpack.c.bf16 %v103_v31, %v102_v30  ;;  %v73_v37 = vld [vmem:[#allocation3 + $0xb8] sm:$0xff] }
  0x1e   :  { %v56_v38 = vld [vmem:[#allocation3 + $0x30] sm:$0xff]  ;;  %799 = vmatprep.subr.bf16.mxu0 %v798_v27  ;;  %v832_v39 = vpack.c.bf16 %v87_v33, %v86_v32  ;;  %v802_v40 = vpack.c.bf16 %v73_v37, %v72_v36  ;;  %v57_v41 = vld [vmem:[#allocation3 + $0x38] sm:$0xff]  ;;  %v74_v47 = vld [vmem:[#allocation3 + $0xc0] sm:$0xff] }
  0x1f   :  { %829 = vmatpush3.bf16.msra.mxu1 %v828_v26  ;;  %v104_v42 = vld [vmem:[#allocation3 + $0x1b0] sm:$0xff]  ;;  %v105_v43 = vld [vmem:[#allocation3 + $0x1b8] sm:$0xff]  ;;  %v75_v48 = vld [vmem:[#allocation3 + $0xc8] sm:$0xff]  ;;  %v804_v49 = vpack.c.bf16 %v57_v41, %v56_v38 }
  0x20   :  { %831 = vmatprep.subr.bf16.mxu1 %v830_v35  ;;  %v834_v44 = vpack.c.bf16 %v105_v43, %v104_v42  ;;  %v88_v45 = vld [vmem:[#allocation3 + $0x130] sm:$0xff]  ;;  %v89_v46 = vld [vmem:[#allocation3 + $0x138] sm:$0xff]  ;;  %v106_v50 = vld [vmem:[#allocation3 + $0x1c0] sm:$0xff]  ;;  %v806_v53 = vpack.c.bf16 %v75_v48, %v74_v47 }
  0x21   :  { %801 = vmatpush3.bf16.msra.mxu0 %v800_v34  ;;  %v107_v51 = vld [vmem:[#allocation3 + $0x1c8] sm:$0xff]  ;;  %v836_v52 = vpack.c.bf16 %v89_v46, %v88_v45  ;;  %v58_v54 = vld [vmem:[#allocation3 + $0x40] sm:$0xff]  ;;  %v76_v59 = vld [vmem:[#allocation3 + $0xd0] sm:$0xff] }
  0x22   :  { %803 = vmatprep.subr.bf16.mxu0 %v802_v40  ;;  %v59_v55 = vld [vmem:[#allocation3 + $0x48] sm:$0xff]  ;;  %v90_v56 = vld [vmem:[#allocation3 + $0x140] sm:$0xff]  ;;  %v838_v57 = vpack.c.bf16 %v107_v51, %v106_v50  ;;  %v77_v60 = vld [vmem:[#allocation3 + $0xd8] sm:$0xff] }
  0x23   :  { %833 = vmatpush3.bf16.msra.mxu1 %v832_v39  ;;  %v91_v58 = vld [vmem:[#allocation3 + $0x148] sm:$0xff]  ;;  %v108_v61 = vld [vmem:[#allocation3 + $0x1d0] sm:$0xff]  ;;  %v109_v62 = vld [vmem:[#allocation3 + $0x1d8] sm:$0xff]  ;;  %v808_v63 = vpack.c.bf16 %v59_v55, %v58_v54  ;;  %v810_v1 = vpack.c.bf16 %v77_v60, %v76_v59 }
  0x24   :  { %835 = vmatprep.subr.bf16.mxu1 %v834_v44  ;;  %v840_v0 = vpack.c.bf16 %v91_v58, %v90_v56  ;;  %v60_v2 = vld [vmem:[#allocation3 + $0x50] sm:$0xff]  ;;  %v61_v3 = vld [vmem:[#allocation3 + $0x58] sm:$0xff]  ;;  %v842_v5 = vpack.c.bf16 %v109_v62, %v108_v61  ;;  %v78_v7 = vld [vmem:[#allocation3 + $0xe0] sm:$0xff] }
  0x25   :  { %805 = vmatpush3.bf16.msra.mxu0 %v804_v49  ;;  %v92_v4 = vld [vmem:[#allocation3 + $0x150] sm:$0xff]  ;;  %v93_v6 = vld [vmem:[#allocation3 + $0x158] sm:$0xff]  ;;  %v79_v8 = vld [vmem:[#allocation3 + $0xe8] sm:$0xff]  ;;  %v812_v11 = vpack.c.bf16 %v61_v3, %v60_v2 }
  0x26   :  { %807 = vmatprep.subr.bf16.mxu0 %v806_v53  ;;  %v110_v9 = vld [vmem:[#allocation3 + $0x1e0] sm:$0xff]  ;;  %v111_v10 = vld [vmem:[#allocation3 + $0x1e8] sm:$0xff]  ;;  %v844_v14 = vpack.c.bf16 %v93_v6, %v92_v4  ;;  %v814_v15 = vpack.c.bf16 %v79_v8, %v78_v7  ;;  %v80_v20 = vld [vmem:[#allocation3 + $0xf0] sm:$0xff] }
  0x27   :  { %837 = vmatpush3.bf16.msra.mxu1 %v836_v52  ;;  %v62_v12 = vld [vmem:[#allocation3 + $0x60] sm:$0xff]  ;;  %v63_v13 = vld [vmem:[#allocation3 + $0x68] sm:$0xff]  ;;  %v846_v19 = vpack.c.bf16 %v111_v10, %v110_v9  ;;  %v81_v21 = vld [vmem:[#allocation3 + $0xf8] sm:$0xff] }
  0x28   :  { %839 = vmatprep.subr.bf16.mxu1 %v838_v57  ;;  %v94_v16 = vld [vmem:[#allocation3 + $0x160] sm:$0xff]  ;;  %v95_v17 = vld [vmem:[#allocation3 + $0x168] sm:$0xff]  ;;  %v45_v22 = vld [vmem:[%s1121_s0 + $0x18] sm:$0xff]  ;;  %v816_v25 = vpack.c.bf16 %v63_v13, %v62_v12  ;;  %v818_v27 = vpack.c.bf16 %v81_v21, %v80_v20 }
  0x29   :  { %809 = vmatpush3.bf16.msra.mxu0 %v808_v63  ;;  %v43_v18 = vld [vmem:[%s1121_s0 + $0x8] sm:$0xff]  ;;  %v112_v23 = vld [vmem:[#allocation3 + $0x1f0] sm:$0xff]  ;;  %v113_v24 = vld [vmem:[#allocation3 + $0x1f8] sm:$0xff]  ;;  %319 = vmatprep.mubr.f32.mxu1 %v45_v22  ;;  %v848_v26 = vpack.c.bf16 %v95_v17, %v94_v16 }
  0x2a   :  { %811 = vmatprep.subr.bf16.mxu0 %v810_v1  ;;  %249 = vmatprep.mubr.f32.mxu0 %v43_v18  ;;  %v64_v28 = vld [vmem:[#allocation3 + $0x70] sm:$0xff]  ;;  %v65_v29 = vld [vmem:[#allocation3 + $0x78] sm:$0xff]  ;;  %v850_v31 = vpack.c.bf16 %v113_v24, %v112_v23  ;;  %v130_v33 = vld [vmem:[#allocation3 + $0x280] sm:$0xff] }
  0x2b   :  { %841 = vmatpush3.bf16.msra.mxu1 %v840_v0  ;;  %v96_v30 = vld [vmem:[#allocation3 + $0x170] sm:$0xff]  ;;  %v97_v32 = vld [vmem:[#allocation3 + $0x178] sm:$0xff]  ;;  %v131_v34 = vld [vmem:[#allocation3 + $0x288] sm:$0xff]  ;;  %v820_v37 = vpack.c.bf16 %v65_v29, %v64_v28 }
  0x2c   :  { %843 = vmatprep.subr.bf16.mxu1 %v842_v5  ;;  %v162_v35 = vld [vmem:[#allocation3 + $0x380] sm:$0xff]  ;;  %v163_v36 = vld [vmem:[#allocation3 + $0x388] sm:$0xff]  ;;  %v852_v38 = vpack.c.bf16 %v97_v32, %v96_v30  ;;  %v854_v39 = vpack.c.bf16 %v131_v34, %v130_v33  ;;  %v132_v45 = vld [vmem:[#allocation3 + $0x290] sm:$0xff] }
  0x2d   :  { %813 = vmatpush3.bf16.msra.mxu0 %v812_v11  ;;  %v114_v40 = vld [vmem:[#allocation3 + $0x200] sm:$0xff]  ;;  %v115_v41 = vld [vmem:[#allocation3 + $0x208] sm:$0xff]  ;;  %v886_v43 = vpack.c.bf16 %v163_v36, %v162_v35  ;;  %v133_v46 = vld [vmem:[#allocation3 + $0x298] sm:$0xff] }
  0x2e   :  { %815 = vmatprep.subr.bf16.mxu0 %v814_v15  ;;  %v146_v42 = vld [vmem:[#allocation3 + $0x300] sm:$0xff]  ;;  %v147_v44 = vld [vmem:[#allocation3 + $0x308] sm:$0xff]  ;;  %v164_v47 = vld [vmem:[#allocation3 + $0x390] sm:$0xff]  ;;  %v856_v50 = vpack.c.bf16 %v115_v41, %v114_v40  ;;  %v858_v53 = vpack.c.bf16 %v133_v46, %v132_v45 }
  0x2f   :  { %845 = vmatpush3.bf16.msra.mxu1 %v844_v14  ;;  %v165_v48 = vld [vmem:[#allocation3 + $0x398] sm:$0xff]  ;;  %v44_v51 = vld [vmem:[%s1121_s0 + $0x10] sm:$0xff]  ;;  %v888_v52 = vpack.c.bf16 %v147_v44, %v146_v42  ;;  %v134_v59 = vld [vmem:[#allocation3 + $0x2a0] sm:$0xff] }
  0x30   :  { %847 = vmatprep.subr.bf16.mxu1 %v846_v19  ;;  %v42_v49 = vld [vmem:[%s1121_s0] sm:$0xff]  ;;  %v116_v54 = vld [vmem:[#allocation3 + $0x210] sm:$0xff]  ;;  %v890_v57 = vpack.c.bf16 %v165_v48, %v164_v47  ;;  %v135_v60 = vld [vmem:[#allocation3 + $0x2a8] sm:$0xff] }
  0x31   :  { %817 = vmatpush3.bf16.msra.mxu0 %v816_v25  ;;  %v117_v55 = vld [vmem:[#allocation3 + $0x218] sm:$0xff]  ;;  %v148_v56 = vld [vmem:[#allocation3 + $0x310] sm:$0xff]  ;;  %v166_v61 = vld [vmem:[#allocation3 + $0x3a0] sm:$0xff]  ;;  %v862_v1 = vpack.c.bf16 %v135_v60, %v134_v59 }
  0x32   :  { %819 = vmatprep.subr.bf16.mxu0 %v818_v27  ;;  %v149_v58 = vld [vmem:[#allocation3 + $0x318] sm:$0xff]  ;;  %v167_v62 = vld [vmem:[#allocation3 + $0x3a8] sm:$0xff]  ;;  %v860_v63 = vpack.c.bf16 %v117_v55, %v116_v54  ;;  %v118_v2 = vld [vmem:[#allocation3 + $0x220] sm:$0xff] }
  0x33   :  { %849 = vmatpush3.bf16.msra.mxu1 %v848_v26  ;;  %v892_v0 = vpack.c.bf16 %v149_v58, %v148_v56  ;;  %v119_v3 = vld [vmem:[#allocation3 + $0x228] sm:$0xff]  ;;  %v150_v4 = vld [vmem:[#allocation3 + $0x320] sm:$0xff]  ;;  %v894_v5 = vpack.c.bf16 %v167_v62, %v166_v61  ;;  %v136_v7 = vld [vmem:[#allocation3 + $0x2b0] sm:$0xff] }
  0x34   :  { %851 = vmatprep.subr.bf16.mxu1 %v850_v31  ;;  %v151_v6 = vld [vmem:[#allocation3 + $0x328] sm:$0xff]  ;;  %v137_v8 = vld [vmem:[#allocation3 + $0x2b8] sm:$0xff]  ;;  %v168_v9 = vld [vmem:[#allocation3 + $0x3b0] sm:$0xff]  ;;  %v864_v11 = vpack.c.bf16 %v119_v3, %v118_v2 }
  0x35   :  { %821 = vmatpush3.bf16.msra.mxu0 %v820_v37  ;;  %v169_v10 = vld [vmem:[#allocation3 + $0x3b8] sm:$0xff]  ;;  %v896_v12 = vpack.c.bf16 %v151_v6, %v150_v4  ;;  %v866_v13 = vpack.c.bf16 %v137_v8, %v136_v7  ;;  %v120_v14 = vld [vmem:[#allocation3 + $0x230] sm:$0xff]  ;;  %v138_v19 = vld [vmem:[#allocation3 + $0x2c0] sm:$0xff] }
  0x36   :  { %855 = vmatprep.subr.bf16.mxu0 %v854_v39  ;;  %v121_v15 = vld [vmem:[#allocation3 + $0x238] sm:$0xff]  ;;  %v152_v16 = vld [vmem:[#allocation3 + $0x330] sm:$0xff]  ;;  %v898_v17 = vpack.c.bf16 %v169_v10, %v168_v9  ;;  %v139_v20 = vld [vmem:[#allocation3 + $0x2c8] sm:$0xff] }
  0x37   :  { %853 = vmatpush3.bf16.msra.mxu1 %v852_v38  ;;  %v153_v18 = vld [vmem:[#allocation3 + $0x338] sm:$0xff]  ;;  %v170_v21 = vld [vmem:[#allocation3 + $0x3c0] sm:$0xff]  ;;  %v171_v22 = vld [vmem:[#allocation3 + $0x3c8] sm:$0xff]  ;;  %v868_v23 = vpack.c.bf16 %v121_v15, %v120_v14  ;;  %v870_v27 = vpack.c.bf16 %v139_v20, %v138_v19 }
  0x38   :  { %887 = vmatprep.subr.bf16.mxu1 %v886_v43  ;;  %250 = vmatmul.mubr.f32.vlgmr.msra.gmra.mrb[0].mxu0 %v42_v49  ;;  %v47_v24 = vld [vmem:[%s1121_s0 + $0x28] sm:$0xff]  ;;  %v49_v25 = vld [vmem:[%s1121_s0 + $0x38] sm:$0xff]  ;;  %v900_v26 = vpack.c.bf16 %v153_v18, %v152_v16  ;;  %v902_v31 = vpack.c.bf16 %v171_v22, %v170_v21  ;;  %v46_v7 = vld [vmem:[%s1121_s0 + $0x20] sm:$0xff] }
  0x39   :  { %857 = vmatpush3.bf16.msra.mxu0 %v856_v50  ;;  %v122_v28 = vld [vmem:[#allocation3 + $0x240] sm:$0xff]  ;;  %v123_v29 = vld [vmem:[#allocation3 + $0x248] sm:$0xff]  ;;  %v140_v33 = vld [vmem:[#allocation3 + $0x2d0] sm:$0xff]  ;;  %389 = vmatprep.mubr.f32.mxu0 %v47_v24 }
  0x3a   :  { %320 = vmatmul.mubr.f32.vlgmr.msra.gmra.mrb[0].mxu1 %v44_v51  ;;  %859 = vmatprep.subr.bf16.mxu0 %v858_v53  ;;  %v154_v30 = vld [vmem:[#allocation3 + $0x340] sm:$0xff]  ;;  %v155_v32 = vld [vmem:[#allocation3 + $0x348] sm:$0xff]  ;;  %v141_v34 = vld [vmem:[#allocation3 + $0x2d8] sm:$0xff]  ;;  %v872_v37 = vpack.c.bf16 %v123_v29, %v122_v28 }
  0x3b   :  { %889 = vmatpush3.bf16.msra.mxu1 %v888_v52  ;;  %v172_v35 = vld [vmem:[#allocation3 + $0x3d0] sm:$0xff]  ;;  %v173_v36 = vld [vmem:[#allocation3 + $0x3d8] sm:$0xff]  ;;  %459 = vmatprep.mubr.f32.mxu1 %v49_v25  ;;  %v904_v38 = vpack.c.bf16 %v155_v32, %v154_v30  ;;  %v874_v39 = vpack.c.bf16 %v141_v34, %v140_v33  ;;  %v142_v45 = vld [vmem:[#allocation3 + $0x2e0] sm:$0xff]  ;;  %v981_v34 = vmov 0.0  }
  0x3c   :  { %891 = vmatprep.subr.bf16.mxu1 %v890_v57  ;;  %v124_v40 = vld [vmem:[#allocation3 + $0x250] sm:$0xff]  ;;  %v125_v41 = vld [vmem:[#allocation3 + $0x258] sm:$0xff]  ;;  %v906_v43 = vpack.c.bf16 %v173_v36, %v172_v35  ;;  %v143_v46 = vld [vmem:[#allocation3 + $0x2e8] sm:$0xff] }
  0x3d   :  { %861 = vmatpush3.bf16.msra.mxu0 %v860_v63  ;;  %v156_v42 = vld [vmem:[#allocation3 + $0x350] sm:$0xff]  ;;  %v157_v44 = vld [vmem:[#allocation3 + $0x358] sm:$0xff]  ;;  %v174_v47 = vld [vmem:[#allocation3 + $0x3e0] sm:$0xff]  ;;  %v876_v49 = vpack.c.bf16 %v125_v41, %v124_v40  ;;  %v878_v51 = vpack.c.bf16 %v143_v46, %v142_v45 }
  0x3e   :  { %863 = vmatprep.subr.bf16.mxu0 %v862_v1  ;;  %v175_v48 = vld [vmem:[#allocation3 + $0x3e8] sm:$0xff]  ;;  %v908_v50 = vpack.c.bf16 %v157_v44, %v156_v42  ;;  %v126_v52 = vld [vmem:[#allocation3 + $0x260] sm:$0xff]  ;;  %v144_v57 = vld [vmem:[#allocation3 + $0x2f0] sm:$0xff] }
  0x3f   :  { %893 = vmatpush3.bf16.msra.mxu1 %v892_v0  ;;  %v127_v53 = vld [vmem:[#allocation3 + $0x268] sm:$0xff]  ;;  %v158_v54 = vld [vmem:[#allocation3 + $0x360] sm:$0xff]  ;;  %v910_v55 = vpack.c.bf16 %v175_v48, %v174_v47  ;;  %v145_v58 = vld [vmem:[#allocation3 + $0x2f8] sm:$0xff] }
  0x40   :  { %895 = vmatprep.subr.bf16.mxu1 %v894_v5  ;;  %v159_v56 = vld [vmem:[#allocation3 + $0x368] sm:$0xff]  ;;  %v176_v59 = vld [vmem:[#allocation3 + $0x3f0] sm:$0xff]  ;;  %v177_v60 = vld [vmem:[#allocation3 + $0x3f8] sm:$0xff]  ;;  %v880_v61 = vpack.c.bf16 %v127_v53, %v126_v52  ;;  %v882_v63 = vpack.c.bf16 %v145_v58, %v144_v57 }
  0x41   :  { %865 = vmatpush3.bf16.msra.mxu0 %v864_v11  ;;  %v912_v62 = vpack.c.bf16 %v159_v56, %v158_v54  ;;  %v128_v0 = vld [vmem:[#allocation3 + $0x270] sm:$0xff]  ;;  %v129_v1 = vld [vmem:[#allocation3 + $0x278] sm:$0xff]  ;;  %v914_v2 = vpack.c.bf16 %v177_v60, %v176_v59  ;;  %v466_v10 = vld [vmem:[%s1124_s3 + $0x8] sm:$0xff] }
  0x42   :  { %867 = vmatprep.subr.bf16.mxu0 %v866_v13  ;;  %v160_v3 = vld [vmem:[#allocation3 + $0x370] sm:$0xff]  ;;  %v161_v4 = vld [vmem:[#allocation3 + $0x378] sm:$0xff]  ;;  %v884_v5 = vpack.c.bf16 %v129_v1, %v128_v0  ;;  %v478_v29 = vld [vmem:[%s1124_s3 + $0x68] sm:$0xff] }
  0x43   :  { %897 = vmatpush3.bf16.msra.mxu1 %v896_v12  ;;  %v916_v6 = vpack.c.bf16 %v161_v4, %v160_v3  ;;  %v48_v8 = vld [vmem:[%s1121_s0 + $0x30] sm:$0xff]  ;;  %v465_v9 = vld [vmem:[%s1124_s3] sm:$0xff]  ;;  %v979_v12 = vmov 0.0|0.0   ;;  %v468_v14 = vld [vmem:[%s1124_s3 + $0x18] sm:$0xff] }
  0x44   :  { %899 = vmatprep.subr.bf16.mxu1 %v898_v17  ;;  %v467_v11 = vld [vmem:[%s1124_s3 + $0x10] sm:$0xff]  ;;  %v919_v13 = vpack.c.bf16 %v466_v10, %v465_v9  ;;  %v469_v16 = vld [vmem:[%s1124_s3 + $0x20] sm:$0xff]  ;;  %v470_v17 = vld [vmem:[%s1124_s3 + $0x28] sm:$0xff] }
  0x45   :  { %869 = vmatpush3.bf16.msra.mxu0 %v868_v23  ;;  %v922_v15 = vpack.c.bf16 %v468_v14, %v467_v11  ;;  %v925_v18 = vpack.c.bf16 %v470_v17, %v469_v16  ;;  %v471_v19 = vld [vmem:[%s1124_s3 + $0x30] sm:$0xff]  ;;  %v472_v20 = vld [vmem:[%s1124_s3 + $0x38] sm:$0xff]  ;;  %v473_v22 = vld [vmem:[%s1124_s3 + $0x40] sm:$0xff] }
  0x46   :  { %871 = vmatprep.subr.bf16.mxu0 %v870_v27  ;;  %v928_v21 = vpack.c.bf16 %v472_v20, %v471_v19  ;;  %v474_v23 = vld [vmem:[%s1124_s3 + $0x48] sm:$0xff]  ;;  %v475_v25 = vld [vmem:[%s1124_s3 + $0x50] sm:$0xff]  ;;  %v477_v28 = vld [vmem:[%s1124_s3 + $0x60] sm:$0xff] }
  0x47   :  { %901 = vmatpush3.bf16.msra.mxu1 %v900_v26  ;;  %v931_v24 = vpack.c.bf16 %v474_v23, %v473_v22  ;;  %v476_v26 = vld [vmem:[%s1124_s3 + $0x58] sm:$0xff]  ;;  %v937_v30 = vpack.c.bf16 %v478_v29, %v477_v28  ;;  %v594_v36 = vld [vmem:[%s1123_s2] ss:$0 sm:$0xff] }
  0x48   :  { %903 = vmatprep.subr.bf16.mxu1 %v902_v31  ;;  %v934_v27 = vpack.c.bf16 %v476_v26, %v475_v25  ;;  %v479_v31 = vld [vmem:[%s1124_s3 + $0x70] sm:$0xff]  ;;  %v480_v32 = vld [vmem:[%s1124_s3 + $0x78] sm:$0xff]  ;;  %v595_v52 = vld [vmem:[%s1125_s4] ss:$0 sm:$0xff] }
  0x49   :  { %873 = vmatpush3.bf16.msra.mxu0 %v872_v37  ;;  %v940_v33 = vpack.c.bf16 %v480_v32, %v479_v31  ;;  %v596_v57 = vld [vmem:[%s1126_s5] ss:$0 sm:$0xff] }
  0x4a   :  { %875 = vmatprep.subr.bf16.mxu0 %v874_v39 }
  0x4b   :  { %905 = vmatpush3.bf16.msra.mxu1 %v904_v38 }
  0x4c   :  { %907 = vmatprep.subr.bf16.mxu1 %v906_v43 }
  0x4d   :  { %877 = vmatpush3.bf16.msra.mxu0 %v876_v49 }
  0x4e   :  { %879 = vmatprep.subr.bf16.mxu0 %v878_v51 }
  0x4f   :  { %909 = vmatpush3.bf16.msra.mxu1 %v908_v50 }
  0x50   :  { %911 = vmatprep.subr.bf16.mxu1 %v910_v55 }
  0x51   :  { %881 = vmatpush3.bf16.msra.mxu0 %v880_v61  ;;  %v597_v61 = vld [vmem:[#allocation2] ss:$0 sm:$0xff] }
  0x52   :  { %883 = vmatprep.subr.bf16.mxu0 %v882_v63 }
  0x53   :  { %913 = vmatpush3.bf16.msra.mxu1 %v912_v62 }
  0x54   :  { %915 = vmatprep.subr.bf16.mxu1 %v914_v2 }
  0x55   :  { %885 = vmatpush3.bf16.msra.mxu0 %v884_v5 }
  0x56   :  { %918 = vmatprep.subr.bf16.mxu0 %v979_v12 }
  0x57   :  { %917 = vmatpush3.bf16.msra.mxu1 %v916_v6 }
  0x58   :  { %390 = vmatmul.mubr.f32.vlgmr.msra.gmra.mrb[2].mxu0 %v46_v7 }
  0x59   :  { %920 = vmatpush3.bf16.msra.mxu0 %v919_v13  ;;  %787 = vmatprep.mubr.msk.f32.mxu0 %vm980_vm0, %v981_v34 }
  0x5a   :  { %460 = vmatmul.mubr.f32.vlgmr.msra.gmra.mrb[2].mxu1 %v48_v8  ;;  %921 = vmatprep.subr.bf16.mxu0 %v979_v12 }
  0x5d   :  { %923 = vmatpush3.bf16.msra.mxu0 %v922_v15 }
  0x5e   :  { %924 = vmatprep.subr.bf16.mxu0 %v979_v12 }
  0x61   :  { %926 = vmatpush3.bf16.msra.mxu0 %v925_v18 }
  0x62   :  { %927 = vmatprep.subr.bf16.mxu0 %v979_v12 }
  0x65   :  { %929 = vmatpush3.bf16.msra.mxu0 %v928_v21 }
  0x66   :  { %930 = vmatprep.subr.bf16.mxu0 %v979_v12 }
  0x69   :  { %932 = vmatpush3.bf16.msra.mxu0 %v931_v24 }
  0x6a   :  { %933 = vmatprep.subr.bf16.mxu0 %v979_v12 }
  0x6d   :  { %935 = vmatpush3.bf16.msra.mxu0 %v934_v27 }
  0x6e   :  { %936 = vmatprep.subr.bf16.mxu0 %v979_v12 }
  0x71   :  { %938 = vmatpush3.bf16.msra.mxu0 %v937_v30 }
  0x72   :  { %939 = vmatprep.subr.bf16.mxu0 %v979_v12 }
  0x75   :  { %941 = vmatpush3.bf16.msra.mxu0 %v940_v33 }
 0x10b   :  { %v630_v35 = vpop.f32.mrb[0].mxu0 }
 0x10c   :  { %v631_v37 = vpop.f32.mrb[1].mxu0 }
 0x10d   :  { %v665_v38 = vpop.f32.mrb[0].mxu1  ;;  %v632_v39 = vadd.f32 %v631_v37, %v630_v35 }
 0x10e   :  { %v666_v40 = vpop.f32.mrb[1].mxu1 }
 0x10f   :  { %v667_v41 = vadd.f32 %v666_v40, %v665_v38  ;;  %v252_v42 = vadd.f32 %v632_v39, %v594_v36 }
 0x111   :  { %v322_v43 = vadd.f32 %v667_v41, %v252_v42 }
 0x12b   :  { %v700_v44 = vpop.f32.mrb[2].mxu0 }
 0x12c   :  { %v701_v45 = vpop.f32.mrb[3].mxu0 }
 0x12d   :  { %v735_v46 = vpop.f32.mrb[2].mxu1  ;;  %v702_v47 = vadd.f32 %v701_v45, %v700_v44 }
 0x12e   :  { %v736_v48 = vpop.f32.mrb[3].mxu1 }
 0x12f   :  { %v737_v49 = vadd.f32 %v736_v48, %v735_v46  ;;  %v392_v50 = vadd.f32 %v702_v47, %v322_v43 }
 0x131   :  { %v462_v51 = vadd.f32 %v737_v49, %v392_v50 }
 0x133   :  { %788 = vmatmul.mubr.f32.vlgmr.msra.gmra.mrb[4].mxu0 %v462_v51 }
 0x206   :  { %v554_v53 = vpop.f32.mrb[4].mxu0 }
 0x207   :  { %v555_v54 = vadd.f32 %v595_v52, %v554_v53  ;;  %v789_v55 = vpop.f32.mrb[5].mxu0 }
 0x209   :  { %v559_v56 = vmul.f32 0.2, %v555_v54  ;;  %vm558_vm1 = vcmp.ge.f32.partialorder %v555_v54, 0.0 }
 0x20b   :  { %v560_v58 = vsel %vm558_vm1, %v555_v54, %v559_v56 }
 0x20c   :  { %v568_v59 = vmul.f32 %v596_v57, %v560_v58 }
 0x20e   :  { %v570_v60 = vsel %vm569_vm2, %v568_v59, 0.0 }
 0x20f   :  { %571 = vadd.xlane.f32.xlu0 %v570_v60 }
 0x29c   :  { %v572_v62 = vpop.xlane.xlu0 %571 }
 0x29d   :  { %v580_v63 = vadd.f32 %v597_v61, %v572_v62 }
 0x29f   :  { %v581_v0 = vsub.f32 0.0, %v580_v63 }
 0x2a1   :  { %v582_v1 = vmul.f32 1.442695, %v581_v0 }
 0x2a3   :  { %948 = vpow2.f32 %v582_v1 }
 0x2ad   :  { %v949_v2 = vpop.eup %948 }
 0x2ae   :  { %v584_v3 = vadd.f32 1.0, %v949_v2 }
 0x2b0   :  { %950 = vrcp.f32 %v584_v3 }
 0x2ba   :  { %v951_v4 = vpop.eup %950 }
 0x2bb   :  { %588 = vst.msk [vmem:[%s1128_s7] sm:$0xff] %vm587_vm3, %v951_v4 }
 0x2bc   :  { %593 = vsyncpa [#allocation4], 1 }

</bundles_post_ra>
